<compile_context>
chip_gen: v6e
topology: v6e:2x2x1
jax: 0.10.0
libtpu: 0.0.40
codegen_flags: <defaults>
</compile_context>

<pallas_src>
import jax
import jax.numpy as jnp
from jax.experimental import pallas as pl
from jax.experimental.pallas import tpu as pltpu


# --------------------------------------------------------------------------- kernel
def highway_kernel(x_ref, wg_ref, wp_ref, bg_ref, bp_ref, o_ref):
    x = x_ref[...]
    xf = x.astype(jnp.float32)
    x_bf = x.astype(jnp.bfloat16)          # bf16 MXU operand; f32 accumulation below.

    # Names mirror the PyTorch module exactly (it really is gate->relu, proj->sigmoid):
    #   x_proj = relu(self.gate(x)); x_gate = sigmoid(self.proj(x))
    x_proj = jnp.dot(x_bf, wg_ref[...], preferred_element_type=jnp.float32) + bg_ref[...]
    x_proj = jnp.maximum(x_proj, 0.0)

    x_gate = jnp.dot(x_bf, wp_ref[...], preferred_element_type=jnp.float32) + bp_ref[...]
    x_gate = jax.nn.sigmoid(x_gate)        # exp on the EUP (free slot)

    # Highway mix: x + g*(p - x)  ==  g*p + (1-g)*x, one fewer VPU op per vreg.
    o_ref[...] = (xf + x_gate * (x_proj - xf)).astype(o_ref.dtype)


# ------------------------------------------------------------------- sizing helpers
def _vmem_budget_bytes():
    """Per-TensorCore VMEM budget; used for BOTH tile selection and vmem_limit_bytes."""
    cap = 64 << 20                                     # conservative default (v7x per-TC)
    try:
        cap = int(pltpu.get_tpu_info().vmem_capacity_bytes) or cap
    except Exception:
        pass
    # ~65% of physical, capped: ~83 MiB on v5e/v6e (128 MiB phys), ~41 MiB on v7x (64 MiB).
    return int(min(int(cap * 0.65), 100 << 20))


def _is_v5e():
    try:
        kind = jax.devices()[0].device_kind.lower()
    except Exception:
        return False
    return ("v5 lite" in kind) or ("v5e" in kind) or ("v5litepod" in kind)


def _choose_tile_n(N, H, x_itemsize, out_itemsize, budget, *, x_bufs, w_bufs):
    """Largest 32-aligned row tile whose streamed buffers + resident weights fit budget."""
    resident = w_bufs * (2 * H * H * 2 + 2 * H * 4)     # bf16 weights + f32 biases
    per_row = (x_bufs * H * x_itemsize                  # streamed x tiles
               + 2 * H * out_itemsize                   # double-buffered out tiles
               + 3 * H * 4)                             # f32 intermediates (xf, proj, gate)
    avail = budget - resident
    tile = int(avail // per_row) if avail > 0 else 0
    tile = (tile // 32) * 32
    # Floor at 256 rows (MXU height on v6e/v7x; also fine for v5e's 128-row MXU) so the
    # MXU / DMA pipelines never starve even when the weights eat most of the budget.
    tile = max(256, min(tile, 1024))
    if N <= tile:
        return N                                        # full-extent row block is legal
    return tile


# --------------------------------------------------------------------------- caller
def _highway_call(x2d, wg, wp, bg, bp, *, tile_n, vmem_limit,
                  use_pipeline_modes, deep_x_buffering):
    N, H = x2d.shape
    x_itemsize = jnp.dtype(x2d.dtype).itemsize
    grid = (pl.cdiv(N, tile_n),)

    def resident(shape):
        # Constant index_map -> no re-DMA; single-buffer to halve resident VMEM.
        if use_pipeline_modes:
            return pl.BlockSpec(shape, lambda i: (0, 0), pipeline_mode=pl.Buffered(1))
        return pl.BlockSpec(shape, lambda i: (0, 0))

    if use_pipeline_modes and deep_x_buffering:
        # v5e small-H is HBM-BW bound: one extra pipeline stage hides the x-tile DMA.
        x_spec = pl.BlockSpec((tile_n, H), lambda i: (i, 0), pipeline_mode=pl.Buffered(3))
    else:
        x_spec = pl.BlockSpec((tile_n, H), lambda i: (i, 0))

    cost = pl.CostEstimate(
        flops=4 * N * H * H + 8 * N * H,                # two matmuls + elementwise mix
        transcendentals=N * H,                          # sigmoid
        bytes_accessed=2 * N * H * x_itemsize + 4 * H * H + 16 * H,
    )

    return pl.pallas_call(
        highway_kernel,
        out_shape=jax.ShapeDtypeStruct((N, H), x2d.dtype),
        grid=grid,
        in_specs=[
            x_spec,                 # streamed activation rows
            resident((H, H)),       # resident gate weight (bf16)
            resident((H, H)),       # resident proj weight (bf16)
            resident((1, H)),       # resident gate bias (f32)
            resident((1, H)),       # resident proj bias (f32)
        ],
        out_specs=pl.BlockSpec((tile_n, H), lambda i: (i, 0)),
        compiler_params=pltpu.CompilerParams(
            dimension_semantics=("parallel",),          # megacore-shard the row axis
            vmem_limit_bytes=int(vmem_limit),
        ),
        cost_estimate=cost,
    )(x2d, wg, wp, bg, bp)


def highway_pallas(x2d, params):
    N, H = x2d.shape
    x_itemsize = jnp.dtype(x2d.dtype).itemsize
    budget = _vmem_budget_bytes()
    v5e_mem_bound = _is_v5e() and H <= 512

    def run(use_pipeline_modes):
        w_bufs = 1 if use_pipeline_modes else 2
        x_bufs = 3 if (use_pipeline_modes and v5e_mem_bound) else 2
        tile_n = _choose_tile_n(N, H, x_itemsize, x_itemsize, budget,
                                x_bufs=x_bufs, w_bufs=w_bufs)
        return _highway_call(
            x2d, params["w_gate_t"], params["w_proj_t"],
            params["b_gate"], params["b_proj"],
            tile_n=tile_n, vmem_limit=budget,
            use_pipeline_modes=use_pipeline_modes,
            deep_x_buffering=v5e_mem_bound)

    try:
        return run(True)
    except Exception:
        # Fallback for jax versions without BlockSpec(pipeline_mode=...) / Buffered(1):
        # default double-buffered specs, with TILE_N re-derived for the 2x weight copy.
        return run(False)


def highway_forward(x, params):
    """x: [..., H]; flattens leading dims, runs the Pallas kernel, restores shape.

    Dropout is identity (eval/inference mode).
    """
    orig_shape = x.shape
    H = orig_shape[-1]
    y2d = highway_pallas(x.reshape(-1, H), params)
    return y2d.reshape(orig_shape)


# --------------------------------------------------------------------- params / ref
def init_highway_params(key, input_size):
    """Mimic nn.Linear default init (uniform(-1/sqrt(H), 1/sqrt(H))).

    Weights are stored pre-transposed ([in, out]) and cast to bf16 (MXU operand dtype);
    biases stay f32 and are added after the f32-accumulated matmul.
    """
    k1, k2, k3, k4 = jax.random.split(key, 4)
    bound = 1.0 / jnp.sqrt(jnp.float32(input_size))
    w_proj = jax.random.uniform(k1, (input_size, input_size), jnp.float32, -bound, bound)
    b_proj = jax.random.uniform(k2, (input_size,), jnp.float32, -bound, bound)
    w_gate = jax.random.uniform(k3, (input_size, input_size), jnp.float32, -bound, bound)
    b_gate = jax.random.uniform(k4, (input_size,), jnp.float32, -bound, bound)
    return {
        "w_gate_t": w_gate.T.astype(jnp.bfloat16),
        "w_proj_t": w_proj.T.astype(jnp.bfloat16),
        "b_gate": b_gate.reshape(1, input_size),
        "b_proj": b_proj.reshape(1, input_size),
    }


def highway_reference(x, params):
    """Pure-JAX reference with matching bf16-operand / f32-accumulate numerics."""
    x_bf = x.astype(jnp.bfloat16)
    pre_gate = jnp.dot(x_bf, params["w_gate_t"],
                       preferred_element_type=jnp.float32) + params["b_gate"]
    pre_proj = jnp.dot(x_bf, params["w_proj_t"],
                       preferred_element_type=jnp.float32) + params["b_proj"]
    x_proj = jax.nn.relu(pre_gate)
    x_gate = jax.nn.sigmoid(pre_proj)
    xf = x.astype(jnp.float32)
    return (x_gate * x_proj + (1.0 - x_gate) * xf).astype(x.dtype)


# ------------------------------------------------------------------------------ demo
if __name__ == "__main__":
    key = jax.random.PRNGKey(0)
    k_param, k_x = jax.random.split(key)

    batch, seq, hidden = 2, 8, 32
    params = init_highway_params(k_param, hidden)
    x = jax.random.normal(k_x, (batch, seq, hidden), dtype=jnp.float32)

    y = jax.block_until_ready(highway_forward(x, params))
    y_ref = highway_reference(x, params)

    assert y.shape == x.shape
    assert jnp.allclose(y, y_ref, atol=1e-3, rtol=1e-3), "mismatch vs reference"
    print("KERNEL_OK")
</pallas_src>

<mosaic_0001>
module attributes {stable_mosaic.version = 11 : i64} {
  func.func @highway_kernel(%arg0: i32, %arg1: memref<16x32xf32, #tpu.memory_space<vmem>>, %arg2: memref<32x32xbf16, #tpu.memory_space<vmem>>, %arg3: memref<32x32xbf16, #tpu.memory_space<vmem>>, %arg4: memref<1x32xf32, #tpu.memory_space<vmem>>, %arg5: memref<1x32xf32, #tpu.memory_space<vmem>>, %arg6: memref<16x32xf32, #tpu.memory_space<vmem>>) attributes {dimension_semantics = [#tpu.dimension_semantics<parallel>], iteration_bounds = array<i64: 1>, scalar_prefetch = 0 : i64, scratch_operands = 0 : i64, tpu.core_type = #tpu.core_type<tc>, window_params = [{transform_indices = @transform_0, window_bounds = array<i64: 16, 32>}, {pipeline_mode = #tpu.pipeline_mode<synchronous>, transform_indices = @transform_1, window_bounds = array<i64: 32, 32>}, {pipeline_mode = #tpu.pipeline_mode<synchronous>, transform_indices = @transform_2, window_bounds = array<i64: 32, 32>}, {pipeline_mode = #tpu.pipeline_mode<synchronous>, transform_indices = @transform_3, window_bounds = array<i64: 1, 32>}, {pipeline_mode = #tpu.pipeline_mode<synchronous>, transform_indices = @transform_4, window_bounds = array<i64: 1, 32>}, {transform_indices = @transform_5, window_bounds = array<i64: 16, 32>}]} {
    %c0 = arith.constant 0 : index
    %c0_0 = arith.constant 0 : index
    %0 = vector.load %arg1[%c0, %c0_0] : memref<16x32xf32, #tpu.memory_space<vmem>>, vector<16x32xf32>
    %1 = arith.truncf %0 : vector<16x32xf32> to vector<16x32xbf16>
    %c0_1 = arith.constant 0 : index
    %c0_2 = arith.constant 0 : index
    %2 = vector.load %arg2[%c0_1, %c0_2] : memref<32x32xbf16, #tpu.memory_space<vmem>>, vector<32x32xbf16>
    %cst = arith.constant dense<0.000000e+00> : vector<16x32xf32>
    %3 = tpu.matmul %1, %2, %cst {dimension_numbers = #tpu.dot_dimension_numbers<[1], [0], [0], [1], [0, 0, 1, 1], [], []>} : vector<16x32xbf16>, vector<32x32xbf16>, vector<16x32xf32> -> vector<16x32xf32>
    %c0_3 = arith.constant 0 : index
    %c0_4 = arith.constant 0 : index
    %4 = vector.load %arg4[%c0_3, %c0_4] : memref<1x32xf32, #tpu.memory_space<vmem>>, vector<1x32xf32>
    %5 = vector.broadcast %4 : vector<1x32xf32> to vector<16x32xf32>
    %6 = arith.addf %3, %5 : vector<16x32xf32>
    %cst_5 = arith.constant 0.000000e+00 : f32
    %7 = vector.broadcast %cst_5 : f32 to vector<16x32xf32>
    %8 = arith.maximumf %6, %7 : vector<16x32xf32>
    %c0_6 = arith.constant 0 : index
    %c0_7 = arith.constant 0 : index
    %9 = vector.load %arg3[%c0_6, %c0_7] : memref<32x32xbf16, #tpu.memory_space<vmem>>, vector<32x32xbf16>
    %cst_8 = arith.constant dense<0.000000e+00> : vector<16x32xf32>
    %10 = tpu.matmul %1, %9, %cst_8 {dimension_numbers = #tpu.dot_dimension_numbers<[1], [0], [0], [1], [0, 0, 1, 1], [], []>} : vector<16x32xbf16>, vector<32x32xbf16>, vector<16x32xf32> -> vector<16x32xf32>
    %c0_9 = arith.constant 0 : index
    %c0_10 = arith.constant 0 : index
    %11 = vector.load %arg5[%c0_9, %c0_10] : memref<1x32xf32, #tpu.memory_space<vmem>>, vector<1x32xf32>
    %12 = vector.broadcast %11 : vector<1x32xf32> to vector<16x32xf32>
    %13 = arith.addf %10, %12 : vector<16x32xf32>
    %14 = arith.negf %13 : vector<16x32xf32>
    %15 = math.exp %14 : vector<16x32xf32>
    %cst_11 = arith.constant 1.000000e+00 : f32
    %16 = vector.broadcast %cst_11 : f32 to vector<16x32xf32>
    %17 = arith.addf %16, %15 : vector<16x32xf32>
    %18 = arith.divf %16, %17 : vector<16x32xf32>
    %19 = arith.subf %8, %0 : vector<16x32xf32>
    %20 = arith.mulf %18, %19 : vector<16x32xf32>
    %21 = arith.addf %0, %20 : vector<16x32xf32>
    %c0_12 = arith.constant 0 : index
    %c0_13 = arith.constant 0 : index
    %22 = vector.load %arg6[%c0_12, %c0_13] : memref<16x32xf32, #tpu.memory_space<vmem>>, vector<16x32xf32>
    tpu.vector_store %arg6[%c0_12, %c0_13], %21 {strides = array<i32>} : memref<16x32xf32, #tpu.memory_space<vmem>>, vector<16x32xf32>,
    return
  }
  func.func @transform_0(%arg0: i32) -> (i32, i32) {
    %c0_i32 = arith.constant 0 : i32
    %c0_i32_0 = arith.constant 0 : i32
    return %arg0, %c0_i32 : i32, i32
  }
  func.func @transform_1(%arg0: i32) -> (i32, i32) {
    %c0_i32 = arith.constant 0 : i32
    %c0_i32_0 = arith.constant 0 : i32
    %c0_i32_1 = arith.constant 0 : i32
    return %c0_i32, %c0_i32_0 : i32, i32
  }
  func.func @transform_2(%arg0: i32) -> (i32, i32) {
    %c0_i32 = arith.constant 0 : i32
    %c0_i32_0 = arith.constant 0 : i32
    %c0_i32_1 = arith.constant 0 : i32
    return %c0_i32, %c0_i32_0 : i32, i32
  }
  func.func @transform_3(%arg0: i32) -> (i32, i32) {
    %c0_i32 = arith.constant 0 : i32
    %c0_i32_0 = arith.constant 0 : i32
    %c0_i32_1 = arith.constant 0 : i32
    return %c0_i32, %c0_i32_0 : i32, i32
  }
  func.func @transform_4(%arg0: i32) -> (i32, i32) {
    %c0_i32 = arith.constant 0 : i32
    %c0_i32_0 = arith.constant 0 : i32
    %c0_i32_1 = arith.constant 0 : i32
    return %c0_i32, %c0_i32_0 : i32, i32
  }
  func.func @transform_5(%arg0: i32) -> (i32, i32) {
    %c0_i32 = arith.constant 0 : i32
    %c0_i32_0 = arith.constant 0 : i32
    return %arg0, %c0_i32 : i32, i32
  }
}

module attributes {stable_mosaic.version = 11 : i64} {
  func.func @highway_kernel(%arg0: i32, %arg1: memref<16x32xf32, #tpu.memory_space<vmem>>, %arg2: memref<32x32xbf16, #tpu.memory_space<vmem>>, %arg3: memref<32x32xbf16, #tpu.memory_space<vmem>>, %arg4: memref<1x32xf32, #tpu.memory_space<vmem>>, %arg5: memref<1x32xf32, #tpu.memory_space<vmem>>, %arg6: memref<16x32xf32, #tpu.memory_space<vmem>>) attributes {dimension_semantics = [#tpu.dimension_semantics<parallel>], iteration_bounds = array<i64: 1>, scalar_prefetch = 0 : i64, scratch_operands = 0 : i64, tpu.core_type = #tpu.core_type<tc>, window_params = [{transform_indices = @transform_0, window_bounds = array<i64: 16, 32>}, {pipeline_mode = #tpu.pipeline_mode<synchronous>, transform_indices = @transform_1, window_bounds = array<i64: 32, 32>}, {pipeline_mode = #tpu.pipeline_mode<synchronous>, transform_indices = @transform_2, window_bounds = array<i64: 32, 32>}, {pipeline_mode = #tpu.pipeline_mode<synchronous>, transform_indices = @transform_3, window_bounds = array<i64: 1, 32>}, {pipeline_mode = #tpu.pipeline_mode<synchronous>, transform_indices = @transform_4, window_bounds = array<i64: 1, 32>}, {transform_indices = @transform_5, window_bounds = array<i64: 16, 32>}]} {
    %c0 = arith.constant 0 : index
    %c0_0 = arith.constant 0 : index
    %0 = vector.load %arg1[%c0, %c0_0] : memref<16x32xf32, #tpu.memory_space<vmem>>, vector<16x32xf32>
    %1 = arith.truncf %0 : vector<16x32xf32> to vector<16x32xbf16>
    %c0_1 = arith.constant 0 : index
    %c0_2 = arith.constant 0 : index
    %2 = vector.load %arg2[%c0_1, %c0_2] : memref<32x32xbf16, #tpu.memory_space<vmem>>, vector<32x32xbf16>
    %cst = arith.constant dense<0.000000e+00> : vector<16x32xf32>
    %3 = tpu.matmul %1, %2, %cst {dimension_numbers = #tpu.dot_dimension_numbers<[1], [0], [0], [1], [0, 0, 1, 1], [], []>} : vector<16x32xbf16>, vector<32x32xbf16>, vector<16x32xf32> -> vector<16x32xf32>
    %c0_3 = arith.constant 0 : index
    %c0_4 = arith.constant 0 : index
    %4 = vector.load %arg4[%c0_3, %c0_4] : memref<1x32xf32, #tpu.memory_space<vmem>>, vector<1x32xf32>
    %5 = vector.broadcast %4 : vector<1x32xf32> to vector<16x32xf32>
    %6 = arith.addf %3, %5 : vector<16x32xf32>
    %cst_5 = arith.constant 0.000000e+00 : f32
    %7 = vector.broadcast %cst_5 : f32 to vector<16x32xf32>
    %8 = arith.maximumf %6, %7 : vector<16x32xf32>
    %c0_6 = arith.constant 0 : index
    %c0_7 = arith.constant 0 : index
    %9 = vector.load %arg3[%c0_6, %c0_7] : memref<32x32xbf16, #tpu.memory_space<vmem>>, vector<32x32xbf16>
    %cst_8 = arith.constant dense<0.000000e+00> : vector<16x32xf32>
    %10 = tpu.matmul %1, %9, %cst_8 {dimension_numbers = #tpu.dot_dimension_numbers<[1], [0], [0], [1], [0, 0, 1, 1], [], []>} : vector<16x32xbf16>, vector<32x32xbf16>, vector<16x32xf32> -> vector<16x32xf32>
    %c0_9 = arith.constant 0 : index
    %c0_10 = arith.constant 0 : index
    %11 = vector.load %arg5[%c0_9, %c0_10] : memref<1x32xf32, #tpu.memory_space<vmem>>, vector<1x32xf32>
    %12 = vector.broadcast %11 : vector<1x32xf32> to vector<16x32xf32>
    %13 = arith.addf %10, %12 : vector<16x32xf32>
    %14 = arith.negf %13 : vector<16x32xf32>
    %15 = math.exp %14 : vector<16x32xf32>
    %cst_11 = arith.constant 1.000000e+00 : f32
    %16 = vector.broadcast %cst_11 : f32 to vector<16x32xf32>
    %17 = arith.addf %16, %15 : vector<16x32xf32>
    %18 = arith.divf %16, %17 : vector<16x32xf32>
    %19 = arith.subf %8, %0 : vector<16x32xf32>
    %20 = arith.mulf %18, %19 : vector<16x32xf32>
    %21 = arith.addf %0, %20 : vector<16x32xf32>
    %c0_12 = arith.constant 0 : index
    %c0_13 = arith.constant 0 : index
    %22 = vector.load %arg6[%c0_12, %c0_13] : memref<16x32xf32, #tpu.memory_space<vmem>>, vector<16x32xf32>
    tpu.vector_store %arg6[%c0_12, %c0_13], %21 {strides = array<i32>} : memref<16x32xf32, #tpu.memory_space<vmem>>, vector<16x32xf32>,
    return
  }
  func.func @transform_0(%arg0: i32) -> (i32, i32) {
    %c0_i32 = arith.constant 0 : i32
    %c0_i32_0 = arith.constant 0 : i32
    return %arg0, %c0_i32 : i32, i32
  }
  func.func @transform_1(%arg0: i32) -> (i32, i32) {
    %c0_i32 = arith.constant 0 : i32
    %c0_i32_0 = arith.constant 0 : i32
    %c0_i32_1 = arith.constant 0 : i32
    return %c0_i32, %c0_i32_0 : i32, i32
  }
  func.func @transform_2(%arg0: i32) -> (i32, i32) {
    %c0_i32 = arith.constant 0 : i32
    %c0_i32_0 = arith.constant 0 : i32
    %c0_i32_1 = arith.constant 0 : i32
    return %c0_i32, %c0_i32_0 : i32, i32
  }
  func.func @transform_3(%arg0: i32) -> (i32, i32) {
    %c0_i32 = arith.constant 0 : i32
    %c0_i32_0 = arith.constant 0 : i32
    %c0_i32_1 = arith.constant 0 : i32
    return %c0_i32, %c0_i32_0 : i32, i32
  }
  func.func @transform_4(%arg0: i32) -> (i32, i32) {
    %c0_i32 = arith.constant 0 : i32
    %c0_i32_0 = arith.constant 0 : i32
    %c0_i32_1 = arith.constant 0 : i32
    return %c0_i32, %c0_i32_0 : i32, i32
  }
  func.func @transform_5(%arg0: i32) -> (i32, i32) {
    %c0_i32 = arith.constant 0 : i32
    %c0_i32_0 = arith.constant 0 : i32
    return %arg0, %c0_i32 : i32, i32
  }
}

</mosaic_0001>

<bundles_post_ra>
// kernel: tpu_custom_call.1
= control target key start
LH: loop header
LB: loop body
LE: loop exit
PB: predicated region body
PF: predicated region fallthrough
CT: control target
= control target key end

     0   :  { %10 = vsyncpa [#allocation3], 0  ;;  %s446_s0 = inlined_call_operand.hbm [shape: f32[16,32], index: 0, kind: input, shape index: {}]   ;;  %s447_s1 = inlined_call_operand.hbm [shape: bf16[32,32], index: 1, kind: input, shape index: {}]   ;;  %s448_s2 = inlined_call_operand.hbm [shape: bf16[32,32], index: 2, kind: input, shape index: {}]   ;;  %s449_s3 = inlined_call_operand.vmem [shape: f32[1,32], index: 3, kind: input, shape index: {}]   ;;  %s450_s4 = inlined_call_operand.vmem [shape: f32[1,32], index: 4, kind: input, shape index: {}]   ;;  %s451_s5 = inlined_call_operand.hbm [shape: f32[16,32], index: 5, kind: output, shape index: {}]  }
   0x1   :  { %11 = vsyncpa [#allocation6], 0 }
   0x2   :  { %12 = vsyncpa [#allocation4], 0  ;;  %s378_s18 = smov [#allocation5]  }
   0x3   :  { %s30_s19 = sshll.u32 %s378_s18, 4  ;;  %s31_s19 = int_to_ptr.vmem [resolvable:$true] %s30_s19 }
   0x4   :  { %s300_s20 = scalar_lea.vmem %s31_s19, 256  ;;  %p305_p1 = scmp.lt.s32.totalorder %s31_s19, %s31_s19 }
   0x5   :  { %p301_p0 = scmp.ne.s32.totalorder %s31_s19, %s300_s20  ;;  %p306_p2 = scmp.lt.s32.totalorder %s300_s20, %s300_s20 }
   0x7   :  { %p307_p3 = por %p306_p2, %p305_p1 }
   0x9   :  { %p308_p4 = pnand %p307_p3, %p301_p0 }
   0xb   :  { %311 = shalt.err (!%p308_p4)
}
   0xc   :  { %s379_s21 = smov 64   ;;  %s380_s22 = smov 4  }
   0xd   :  { %36 = dma.hbm_to_vmem [thread:$0]  %s447_s1, 256, %s31_s19, [#allocation6], %s379_s21, %s379_s21, %s380_s22  }
   0xe   :  { %s381_s25 = smov [#allocation2]  }
   0xf   :  { %s18_s26 = sshll.u32 %s381_s25, 4  ;;  %s19_s26 = int_to_ptr.vmem [resolvable:$true] %s18_s26 }
  0x10   :  { %s320_s27 = scalar_lea.vmem %s19_s26, 256  ;;  %p325_p6 = scmp.lt.s32.totalorder %s19_s26, %s19_s26 }
  0x11   :  { %p321_p5 = scmp.ne.s32.totalorder %s19_s26, %s320_s27  ;;  %p326_p7 = scmp.lt.s32.totalorder %s320_s27, %s320_s27 }
  0x13   :  { %p327_p8 = por %p326_p7, %p325_p6 }
  0x15   :  { %p328_p9 = pnand %p327_p8, %p321_p5 }
  0x17   :  { %331 = shalt.err (!%p328_p9)
}
  0x18   :  { %s382_s28 = smov 128   ;;  %s383_s29 = smov 8  }
  0x19   :  { %24 = dma.hbm_to_vmem [thread:$0]  %s446_s0, 256, %s19_s26, [#allocation3], %s382_s28, %s382_s28, %s383_s29  }
  0x1a   :  { %s384_s1 = smov [#allocation7]  }
  0x1b   :  { %s42_s7 = sshll.u32 %s384_s1, 4  ;;  %s43_s7 = int_to_ptr.vmem [resolvable:$true] %s42_s7 }
  0x1c   :  { %s340_s8 = scalar_lea.vmem %s43_s7, 256  ;;  %p345_p11 = scmp.lt.s32.totalorder %s43_s7, %s43_s7 }
  0x1d   :  { %p341_p10 = scmp.ne.s32.totalorder %s43_s7, %s340_s8  ;;  %p346_p12 = scmp.lt.s32.totalorder %s340_s8, %s340_s8 }
  0x1f   :  { %p347_p13 = por %p346_p12, %p345_p11 }
  0x21   :  { %p348_p0 = pnand %p347_p13, %p341_p10 }
  0x23   :  { %351 = shalt.err (!%p348_p0)
}
  0x24   :  { %48 = dma.hbm_to_vmem [thread:$0]  %s448_s2, 256, %s43_s7, [#allocation6], %s379_s21, %s379_s21, %s380_s22  }
  0x25   :  { %372 = dma.done.wait [#allocation3], 256  }
  0x26   :  { %373 = vsyncadd [#allocation3], 4294967040 }
  0x27   :  { %374 = dma.done.wait [#allocation6], 512  }
  0x28   :  { %375 = vsyncadd [#allocation6], 4294966784  ;;  %v385_v0 = vmov 0.0   ;;  %vm386_vm0 = vmmov 0   ;;  %v280_v1 = vld [vmem:[#allocation7 + $0x8] sm:$0xff]   ;;  %v281_v2 = vld [vmem:[#allocation7] sm:$0xff]  }
  0x29   :  { %262 = vmatprep.subr.bf16.mxu1 %v385_v0  ;;  %266 = vmatprep.mubr.msk.bf16.mxu1 %vm386_vm0, %v385_v0  ;;  %v63_v3 = vld [vmem:[#allocation2] sm:$0xff]  ;;  %v64_v4 = vld [vmem:[#allocation2 + $0x8] sm:$0xff]  ;;  %v282_v5 = vld [vmem:[#allocation5 + $0x8] sm:$0xff]   ;;  %vm89_vm1 = vcmask 261120  }
  0x2a   :  { %254 = vmatprep.subr.bf16.mxu0 %v385_v0  ;;  %258 = vmatprep.mubr.msk.bf16.mxu0 %vm386_vm0, %v385_v0  ;;  %v65_v6 = vpack.c.bf16 %v64_v4, %v63_v3  ;;  %v283_v7 = vld [vmem:[#allocation5] sm:$0xff]   ;;  %v242_v8 = vld [vmem:[%s450_s4] ss:$0 sm:$0xff]  ;;  %s387_s4 = smov [#allocation8]  }
  0x2b   :  { %263 = vmatpush3.bf16.msra.mxu1 %v280_v1  ;;  %255 = vmatpush3.bf16.msra.mxu0 %v282_v5  ;;  %v238_v23 = vld [vmem:[%s449_s3] ss:$0 sm:$0xff]  ;;  %s225_s13 = sshll.u32 %s387_s4, 4  ;;  %s226_s13 = int_to_ptr.vmem [resolvable:$true] %s225_s13 }
  0x2c   :  { %264 = vmatprep.subr.bf16.mxu1 %v385_v0  ;;  %256 = vmatprep.subr.bf16.mxu0 %v385_v0  ;;  %s352_s3 = scalar_lea.vmem %s226_s13, 256  ;;  %p357_p2 = scmp.lt.s32.totalorder %s226_s13, %s226_s13 }
  0x2d   :  { %p353_p1 = scmp.ne.s32.totalorder %s226_s13, %s352_s3  ;;  %p358_p3 = scmp.lt.s32.totalorder %s352_s3, %s352_s3 }
  0x2f   :  { %265 = vmatpush3.bf16.msra.mxu1 %v281_v2  ;;  %257 = vmatpush3.bf16.msra.mxu0 %v283_v7  ;;  %p359_p4 = por %p358_p3, %p357_p2 }
  0x31   :  { %p360_p5 = pnand %p359_p4, %p353_p1 }
  0x32   :  { %267 = vmatmul.mubr.msk.bf16.vlgmr.msra.gmra.mxu1 %vm89_vm1, %v65_v6  ;;  %259 = vmatmul.mubr.msk.bf16.vlgmr.msra.gmra.mxu0 %vm89_vm1, %v65_v6 }
  0xf2   :  { %v193_v9 = vpop.f32.mrf.mxu1  ;;  %v127_v13 = vpop.f32.mrf.mxu0 }
  0xf3   :  { %v194_v10 = vadd.f32 %v242_v8, %v193_v9  ;;  %v128_v26 = vadd.f32 %v238_v23, %v127_v13 }
  0xf4   :  { %v268_v11 = vpop.f32.mrf.mxu1  ;;  %v260_v16 = vpop.f32.mrf.mxu0 }
  0xf5   :  { %v246_v12 = vmul.f32 -1.442695, %v194_v10  ;;  %v134_v27 = vmax.f32 %v128_v26, 0.0 }
  0xf6   :  { %v196_v14 = vpop.f32.mrf.mxu1  ;;  %v130_v19 = vpop.f32.mrf.mxu0 }
  0xf7   :  { %284 = vpow2.f32 %v246_v12  ;;  %v197_v15 = vadd.f32 %v242_v8, %v196_v14  ;;  %v131_v28 = vadd.f32 %v238_v23, %v130_v19  ;;  %v212_v29 = vsub.f32 %v134_v27, %v63_v3 }
  0xf8   :  { %v269_v17 = vpop.f32.mrf.mxu1  ;;  %v261_v20 = vpop.f32.mrf.mxu0 }
  0xf9   :  { %v247_v18 = vmul.f32 -1.442695, %v197_v15  ;;  %v135_v30 = vmax.f32 %v131_v28, 0.0 }
  0xfb   :  { %286 = vpow2.f32 %v247_v18  ;;  %v213_v34 = vsub.f32 %v135_v30, %v64_v4 }
 0x104   :  { %v285_v21 = vpop.eup %284 }
 0x105   :  { %v206_v22 = vadd.f32 1.0, %v285_v21 }
 0x107   :  { %288 = vrcp.f32 %v206_v22 }
 0x108   :  { %v287_v24 = vpop.eup %286 }
 0x109   :  { %v207_v25 = vadd.f32 1.0, %v287_v24 }
 0x10b   :  { %290 = vrcp.f32 %v207_v25 }
 0x114   :  { %v289_v31 = vpop.eup %288 }
 0x115   :  { %v214_v32 = vmul.f32 %v289_v31, %v212_v29 }
 0x117   :  { %v216_v33 = vadd.f32 %v214_v32, %v63_v3 }
 0x118   :  { %v291_v35 = vpop.eup %290 }
 0x119   :  { %218 = vst.msk [vmem:[#allocation8] sm:$0xff] %vm89_vm1, %v216_v33  ;;  %v215_v36 = vmul.f32 %v291_v35, %v213_v34 }
 0x11b   :  { %v217_v37 = vadd.f32 %v215_v36, %v64_v4 }
 0x11d   :  { %219 = vst.msk [vmem:[#allocation8 + $0x8] sm:$0xff] %vm89_vm1, %v217_v37 }
 0x11e   :  { %363 = shalt.err (!%p360_p5)
}
 0x11f   :  { %231 = dma.vmem_to_hbm [thread:$0]  %s226_s13, 256, %s451_s5, [#allocation4], %s382_s28, %s382_s28, %s383_s29  }
 0x120   :  { %376 = dma.done.wait [#allocation4], 256  }
 0x121   :  { %377 = vsyncadd [#allocation4], 4294967040 }
 0x122   :  { %235 = vsyncpa [#allocation3], 1 }
 0x123   :  { %236 = vsyncpa [#allocation6], 1 }
 0x124   :  { %237 = vsyncpa [#allocation4], 1 }

// kernel: tpu_custom_call.1
= control target key start
LH: loop header
LB: loop body
LE: loop exit
PB: predicated region body
PF: predicated region fallthrough
CT: control target
= control target key end

     0   :  { %10 = vsyncpa [#allocation3], 0  ;;  %s446_s0 = inlined_call_operand.hbm [shape: f32[16,32], index: 0, kind: input, shape index: {}]   ;;  %s447_s1 = inlined_call_operand.hbm [shape: bf16[32,32], index: 1, kind: input, shape index: {}]   ;;  %s448_s2 = inlined_call_operand.hbm [shape: bf16[32,32], index: 2, kind: input, shape index: {}]   ;;  %s449_s3 = inlined_call_operand.vmem [shape: f32[1,32], index: 3, kind: input, shape index: {}]   ;;  %s450_s4 = inlined_call_operand.vmem [shape: f32[1,32], index: 4, kind: input, shape index: {}]   ;;  %s451_s5 = inlined_call_operand.hbm [shape: f32[16,32], index: 5, kind: output, shape index: {}]  }
   0x1   :  { %11 = vsyncpa [#allocation6], 0 }
   0x2   :  { %12 = vsyncpa [#allocation4], 0  ;;  %s378_s18 = smov [#allocation5]  }
   0x3   :  { %s30_s19 = sshll.u32 %s378_s18, 4  ;;  %s31_s19 = int_to_ptr.vmem [resolvable:$true] %s30_s19 }
   0x4   :  { %s300_s20 = scalar_lea.vmem %s31_s19, 256  ;;  %p305_p1 = scmp.lt.s32.totalorder %s31_s19, %s31_s19 }
   0x5   :  { %p301_p0 = scmp.ne.s32.totalorder %s31_s19, %s300_s20  ;;  %p306_p2 = scmp.lt.s32.totalorder %s300_s20, %s300_s20 }
   0x7   :  { %p307_p3 = por %p306_p2, %p305_p1 }
   0x9   :  { %p308_p4 = pnand %p307_p3, %p301_p0 }
   0xb   :  { %311 = shalt.err (!%p308_p4)
}
   0xc   :  { %s379_s21 = smov 64   ;;  %s380_s22 = smov 4  }
   0xd   :  { %36 = dma.hbm_to_vmem [thread:$0]  %s447_s1, 256, %s31_s19, [#allocation6], %s379_s21, %s379_s21, %s380_s22  }
   0xe   :  { %s381_s25 = smov [#allocation2]  }
   0xf   :  { %s18_s26 = sshll.u32 %s381_s25, 4  ;;  %s19_s26 = int_to_ptr.vmem [resolvable:$true] %s18_s26 }
  0x10   :  { %s320_s27 = scalar_lea.vmem %s19_s26, 256  ;;  %p325_p6 = scmp.lt.s32.totalorder %s19_s26, %s19_s26 }
  0x11   :  { %p321_p5 = scmp.ne.s32.totalorder %s19_s26, %s320_s27  ;;  %p326_p7 = scmp.lt.s32.totalorder %s320_s27, %s320_s27 }
  0x13   :  { %p327_p8 = por %p326_p7, %p325_p6 }
  0x15   :  { %p328_p9 = pnand %p327_p8, %p321_p5 }
  0x17   :  { %331 = shalt.err (!%p328_p9)
}
  0x18   :  { %s382_s28 = smov 128   ;;  %s383_s29 = smov 8  }
  0x19   :  { %24 = dma.hbm_to_vmem [thread:$0]  %s446_s0, 256, %s19_s26, [#allocation3], %s382_s28, %s382_s28, %s383_s29  }
  0x1a   :  { %s384_s1 = smov [#allocation7]  }
  0x1b   :  { %s42_s7 = sshll.u32 %s384_s1, 4  ;;  %s43_s7 = int_to_ptr.vmem [resolvable:$true] %s42_s7 }
  0x1c   :  { %s340_s8 = scalar_lea.vmem %s43_s7, 256  ;;  %p345_p11 = scmp.lt.s32.totalorder %s43_s7, %s43_s7 }
  0x1d   :  { %p341_p10 = scmp.ne.s32.totalorder %s43_s7, %s340_s8  ;;  %p346_p12 = scmp.lt.s32.totalorder %s340_s8, %s340_s8 }
  0x1f   :  { %p347_p13 = por %p346_p12, %p345_p11 }
  0x21   :  { %p348_p0 = pnand %p347_p13, %p341_p10 }
  0x23   :  { %351 = shalt.err (!%p348_p0)
}
  0x24   :  { %48 = dma.hbm_to_vmem [thread:$0]  %s448_s2, 256, %s43_s7, [#allocation6], %s379_s21, %s379_s21, %s380_s22  }
  0x25   :  { %372 = dma.done.wait [#allocation3], 256  }
  0x26   :  { %373 = vsyncadd [#allocation3], 4294967040 }
  0x27   :  { %374 = dma.done.wait [#allocation6], 512  }
  0x28   :  { %375 = vsyncadd [#allocation6], 4294966784  ;;  %v385_v0 = vmov 0.0   ;;  %vm386_vm0 = vmmov 0   ;;  %v280_v1 = vld [vmem:[#allocation7 + $0x8] sm:$0xff]   ;;  %v281_v2 = vld [vmem:[#allocation7] sm:$0xff]  }
  0x29   :  { %262 = vmatprep.subr.bf16.mxu1 %v385_v0  ;;  %266 = vmatprep.mubr.msk.bf16.mxu1 %vm386_vm0, %v385_v0  ;;  %v63_v3 = vld [vmem:[#allocation2] sm:$0xff]  ;;  %v64_v4 = vld [vmem:[#allocation2 + $0x8] sm:$0xff]  ;;  %v282_v5 = vld [vmem:[#allocation5 + $0x8] sm:$0xff]   ;;  %vm89_vm1 = vcmask 261120  }
  0x2a   :  { %254 = vmatprep.subr.bf16.mxu0 %v385_v0  ;;  %258 = vmatprep.mubr.msk.bf16.mxu0 %vm386_vm0, %v385_v0  ;;  %v65_v6 = vpack.c.bf16 %v64_v4, %v63_v3  ;;  %v283_v7 = vld [vmem:[#allocation5] sm:$0xff]   ;;  %v242_v8 = vld [vmem:[%s450_s4] ss:$0 sm:$0xff]  ;;  %s387_s4 = smov [#allocation8]  }
  0x2b   :  { %263 = vmatpush3.bf16.msra.mxu1 %v280_v1  ;;  %255 = vmatpush3.bf16.msra.mxu0 %v282_v5  ;;  %v238_v23 = vld [vmem:[%s449_s3] ss:$0 sm:$0xff]  ;;  %s225_s13 = sshll.u32 %s387_s4, 4  ;;  %s226_s13 = int_to_ptr.vmem [resolvable:$true] %s225_s13 }
  0x2c   :  { %264 = vmatprep.subr.bf16.mxu1 %v385_v0  ;;  %256 = vmatprep.subr.bf16.mxu0 %v385_v0  ;;  %s352_s3 = scalar_lea.vmem %s226_s13, 256  ;;  %p357_p2 = scmp.lt.s32.totalorder %s226_s13, %s226_s13 }
  0x2d   :  { %p353_p1 = scmp.ne.s32.totalorder %s226_s13, %s352_s3  ;;  %p358_p3 = scmp.lt.s32.totalorder %s352_s3, %s352_s3 }
  0x2f   :  { %265 = vmatpush3.bf16.msra.mxu1 %v281_v2  ;;  %257 = vmatpush3.bf16.msra.mxu0 %v283_v7  ;;  %p359_p4 = por %p358_p3, %p357_p2 }
  0x31   :  { %p360_p5 = pnand %p359_p4, %p353_p1 }
  0x32   :  { %267 = vmatmul.mubr.msk.bf16.vlgmr.msra.gmra.mxu1 %vm89_vm1, %v65_v6  ;;  %259 = vmatmul.mubr.msk.bf16.vlgmr.msra.gmra.mxu0 %vm89_vm1, %v65_v6 }
  0xf2   :  { %v193_v9 = vpop.f32.mrf.mxu1  ;;  %v127_v13 = vpop.f32.mrf.mxu0 }
  0xf3   :  { %v194_v10 = vadd.f32 %v242_v8, %v193_v9  ;;  %v128_v26 = vadd.f32 %v238_v23, %v127_v13 }
  0xf4   :  { %v268_v11 = vpop.f32.mrf.mxu1  ;;  %v260_v16 = vpop.f32.mrf.mxu0 }
  0xf5   :  { %v246_v12 = vmul.f32 -1.442695, %v194_v10  ;;  %v134_v27 = vmax.f32 %v128_v26, 0.0 }
  0xf6   :  { %v196_v14 = vpop.f32.mrf.mxu1  ;;  %v130_v19 = vpop.f32.mrf.mxu0 }
  0xf7   :  { %284 = vpow2.f32 %v246_v12  ;;  %v197_v15 = vadd.f32 %v242_v8, %v196_v14  ;;  %v131_v28 = vadd.f32 %v238_v23, %v130_v19  ;;  %v212_v29 = vsub.f32 %v134_v27, %v63_v3 }
  0xf8   :  { %v269_v17 = vpop.f32.mrf.mxu1  ;;  %v261_v20 = vpop.f32.mrf.mxu0 }
  0xf9   :  { %v247_v18 = vmul.f32 -1.442695, %v197_v15  ;;  %v135_v30 = vmax.f32 %v131_v28, 0.0 }
  0xfb   :  { %286 = vpow2.f32 %v247_v18  ;;  %v213_v34 = vsub.f32 %v135_v30, %v64_v4 }
 0x104   :  { %v285_v21 = vpop.eup %284 }
 0x105   :  { %v206_v22 = vadd.f32 1.0, %v285_v21 }
 0x107   :  { %288 = vrcp.f32 %v206_v22 }
 0x108   :  { %v287_v24 = vpop.eup %286 }
 0x109   :  { %v207_v25 = vadd.f32 1.0, %v287_v24 }
 0x10b   :  { %290 = vrcp.f32 %v207_v25 }
 0x114   :  { %v289_v31 = vpop.eup %288 }
 0x115   :  { %v214_v32 = vmul.f32 %v289_v31, %v212_v29 }
 0x117   :  { %v216_v33 = vadd.f32 %v214_v32, %v63_v3 }
 0x118   :  { %v291_v35 = vpop.eup %290 }
 0x119   :  { %218 = vst.msk [vmem:[#allocation8] sm:$0xff] %vm89_vm1, %v216_v33  ;;  %v215_v36 = vmul.f32 %v291_v35, %v213_v34 }
 0x11b   :  { %v217_v37 = vadd.f32 %v215_v36, %v64_v4 }
 0x11d   :  { %219 = vst.msk [vmem:[#allocation8 + $0x8] sm:$0xff] %vm89_vm1, %v217_v37 }
 0x11e   :  { %363 = shalt.err (!%p360_p5)
}
 0x11f   :  { %231 = dma.vmem_to_hbm [thread:$0]  %s226_s13, 256, %s451_s5, [#allocation4], %s382_s28, %s382_s28, %s383_s29  }
 0x120   :  { %376 = dma.done.wait [#allocation4], 256  }
 0x121   :  { %377 = vsyncadd [#allocation4], 4294967040 }
 0x122   :  { %235 = vsyncpa [#allocation3], 1 }
 0x123   :  { %236 = vsyncpa [#allocation6], 1 }
 0x124   :  { %237 = vsyncpa [#allocation4], 1 }

</bundles_post_ra>
